<compile_context>
chip_gen: v7x
topology: tpu7x:2x2x1
jax: 0.10.0
libtpu: 0.0.40
codegen_flags: <defaults>
</compile_context>

<pallas_src>
import functools

import jax
import jax.numpy as jnp
from jax.experimental import pallas as pl
from jax.experimental.pallas import tpu as pltpu


# ----------------------------------------------------------------------------
# Kernels
# ----------------------------------------------------------------------------
def _mixpool_folded_kernel(x_ref, o_ref, *, k, p, h, w, nc, alpha):
    """s == k path.

    x_ref : (k*k, tile_ho, t_lane) — window position on the leading axis,
            output rows on sublanes, Wo*N*C folded on lanes (zero padded).
    o_ref : (tile_ho, t_lane)
    """
    tile_ho, t_lane = o_ref.shape

    if p > 0:
        # Tiny broadcast masks (review #3): rows depend only on (oh, ki),
        # columns only on (lane, kj).
        row0 = pl.program_id(0) * tile_ho
        oh = jax.lax.broadcasted_iota(jnp.int32, (tile_ho, 1), 0) + row0
        lane0 = pl.program_id(1) * t_lane
        lane = jax.lax.broadcasted_iota(jnp.int32, (1, t_lane), 1) + lane0
        wi = lane // nc
        row_bad = [((oh * k + ki) < p) | ((oh * k + ki) >= p + h)
                   for ki in range(k)]
        col_bad = [((wi * k + kj) < p) | ((wi * k + kj) >= p + w)
                   for kj in range(k)]

    mx = jnp.full((tile_ho, t_lane), -jnp.inf, dtype=jnp.float32)
    sm = jnp.zeros((tile_ho, t_lane), dtype=jnp.float32)
    for ki in range(k):
        for kj in range(k):
            # Contiguous slab load in native dtype, upcast per window (review #2).
            win = x_ref[ki * k + kj].astype(jnp.float32)
            sm = sm + win                      # avg branch keeps zero padding
            if p > 0:
                win = jnp.where(row_bad[ki] | col_bad[kj], -jnp.inf, win)
            mx = jnp.maximum(mx, win)

    avg = sm * (1.0 / float(k * k))
    o_ref[...] = (avg + alpha * (mx - avg)).astype(o_ref.dtype)


def _mixpool_general_kernel(x_ref, o_ref, *, k, s, p, h, w, alpha):
    """s != k fallback: whole padded plane per lane tile.

    x_ref : (hp, wp, tnc) zero-padded channels-last block, native dtype.
    o_ref : (ho, wo, tnc)
    """
    ho, wo, tnc = o_ref.shape
    x = x_ref[...].astype(jnp.float32)         # single upcast block (no max copy)

    if p > 0:
        oh = jax.lax.broadcasted_iota(jnp.int32, (ho, 1, 1), 0)
        ow = jax.lax.broadcasted_iota(jnp.int32, (1, wo, 1), 1)
        row_bad = [((oh * s + ki) < p) | ((oh * s + ki) >= p + h)
                   for ki in range(k)]
        col_bad = [((ow * s + kj) < p) | ((ow * s + kj) >= p + w)
                   for kj in range(k)]

    mx = jnp.full((ho, wo, tnc), -jnp.inf, dtype=jnp.float32)
    sm = jnp.zeros((ho, wo, tnc), dtype=jnp.float32)
    for ki in range(k):
        for kj in range(k):
            win = jax.lax.slice(
                x, (ki, kj, 0),
                (ki + (ho - 1) * s + 1, kj + (wo - 1) * s + 1, tnc),
                (s, s, 1))
            sm = sm + win
            if p > 0:
                win = jnp.where(row_bad[ki] | col_bad[kj], -jnp.inf, win)
            mx = jnp.maximum(mx, win)

    avg = sm * (1.0 / float(k * k))
    o_ref[...] = (avg + alpha * (mx - avg)).astype(o_ref.dtype)


# ----------------------------------------------------------------------------
# Tile selection
# ----------------------------------------------------------------------------
def _pick_tiles(ho, lane, bytes_per_out_elem, target_bytes):
    """Pick (tile_ho, t_lane) divisors satisfying the TPU (8,128) block rule:
    tile_ho multiple of 8 or == ho, t_lane multiple of 128 or == lane.
    Largest input block <= target_bytes; otherwise the smallest valid block."""
    lane_cands = [d for d in range(1, lane + 1)
                  if lane % d == 0 and (d % 128 == 0 or d == lane)]
    ho_cands = [d for d in range(1, ho + 1)
                if ho % d == 0 and (d % 8 == 0 or d == ho)]
    best, best_b = None, -1
    small, small_b = None, None
    for tl in lane_cands:
        for th in ho_cands:
            b = th * tl * bytes_per_out_elem
            if b <= target_bytes and b > best_b:
                best, best_b = (th, tl), b
            if small_b is None or b < small_b:
                small, small_b = (th, tl), b
    return best if best is not None else small


# ----------------------------------------------------------------------------
# Pallas-call wrappers
# ----------------------------------------------------------------------------
_TARGET_BLOCK_BYTES = 2 << 20          # ~2 MiB input block per grid step
_VMEM_LIMIT_BYTES = 32 * 1024 * 1024   # safe on v5e/v6e/v7x


def _mixpool_folded(xcl, *, k, p, h, w, nc, ho, wo, alpha, out_dtype):
    """s == k: fold (ki, kj) out of H/W and (wi, c) onto the lane axis."""
    hu, wu = ho * k, wo * k
    xf = (xcl[:hu, :wu, :]
          .reshape(ho, k, wo, k, nc)
          .transpose(1, 3, 0, 2, 4)            # (ki, kj, oh, wi, c)
          .reshape(k * k, ho, wo * nc))
    lane = wo * nc
    itemsize = jnp.dtype(xcl.dtype).itemsize
    tile_ho, t_lane = _pick_tiles(ho, lane, k * k * itemsize,
                                  _TARGET_BLOCK_BYTES)
    grid = (ho // tile_ho, lane // t_lane)

    kernel = functools.partial(_mixpool_folded_kernel,
                               k=k, p=p, h=h, w=w, nc=nc, alpha=alpha)
    return pl.pallas_call(
        kernel,
        out_shape=jax.ShapeDtypeStruct((ho, lane), out_dtype),
        grid=grid,
        in_specs=[pl.BlockSpec((k * k, tile_ho, t_lane),
                               lambda hi, li: (0, hi, li))],
        out_specs=pl.BlockSpec((tile_ho, t_lane), lambda hi, li: (hi, li)),
        compiler_params=pltpu.CompilerParams(
            dimension_semantics=("parallel", "parallel"),
            vmem_limit_bytes=_VMEM_LIMIT_BYTES),
    )(xf)


def _mixpool_general(xcl, *, k, s, p, h, w, nc, ho, wo, alpha, out_dtype):
    """s != k fallback: whole padded plane per step, tiled over N*C only."""
    hp, wp = h + 2 * p, w + 2 * p
    itemsize = jnp.dtype(xcl.dtype).itemsize
    nc_cands = [d for d in range(1, nc + 1)
                if nc % d == 0 and (d % 128 == 0 or d == nc)]
    fitting = [d for d in nc_cands
               if hp * wp * d * itemsize <= _TARGET_BLOCK_BYTES]
    tnc = max(fitting) if fitting else min(nc_cands)
    grid = (nc // tnc,)

    kernel = functools.partial(_mixpool_general_kernel,
                               k=k, s=s, p=p, h=h, w=w, alpha=alpha)
    return pl.pallas_call(
        kernel,
        out_shape=jax.ShapeDtypeStruct((ho, wo, nc), out_dtype),
        grid=grid,
        in_specs=[pl.BlockSpec((hp, wp, tnc), lambda li: (0, 0, li))],
        out_specs=pl.BlockSpec((ho, wo, tnc), lambda li: (0, 0, li)),
        compiler_params=pltpu.CompilerParams(
            dimension_semantics=("parallel",),
            vmem_limit_bytes=_VMEM_LIMIT_BYTES),
    )(xcl)


def mixpool(x, alpha, *, kernel_size, stride, padding):
    """x: [N, C, H, W]; returns [N, C, Ho, Wo] in x.dtype (PyTorch semantics)."""
    n, c, h, w = x.shape
    k, s, p = int(kernel_size), int(stride), int(padding)
    assert p <= k // 2, "PyTorch pooling requires padding <= kernel_size // 2"
    alpha = float(alpha)                       # baked as a compile-time constant
    nc = n * c
    ho = (h + 2 * p - k) // s + 1
    wo = (w + 2 * p - k) // s + 1

    # NCHW -> channels-last plane [H, W, N*C]; single zero-padded copy
    # (-inf padding for the max branch is recovered in-kernel).
    xcl = jnp.transpose(x, (2, 3, 0, 1)).reshape(h, w, nc)
    if p > 0:
        xcl = jnp.pad(xcl, ((p, p), (p, p), (0, 0)))

    if s == k:
        out = _mixpool_folded(xcl, k=k, p=p, h=h, w=w, nc=nc, ho=ho, wo=wo,
                              alpha=alpha, out_dtype=x.dtype)
        out = out.reshape(ho, wo, n, c)
    else:
        out = _mixpool_general(xcl, k=k, s=s, p=p, h=h, w=w, nc=nc, ho=ho,
                               wo=wo, alpha=alpha, out_dtype=x.dtype)
        out = out.reshape(ho, wo, n, c)
    return out.transpose(2, 3, 0, 1)


# ----------------------------------------------------------------------------
# Pure-JAX reference (PyTorch pooling semantics) and self-test
# ----------------------------------------------------------------------------
def _reference(x, alpha, *, kernel_size, stride, padding):
    k, s, p = kernel_size, stride, padding
    xm = jnp.pad(x, ((0, 0), (0, 0), (p, p), (p, p)), constant_values=-jnp.inf)
    xa = jnp.pad(x, ((0, 0), (0, 0), (p, p), (p, p)), constant_values=0.0)
    mx = jax.lax.reduce_window(xm, -jnp.inf, jax.lax.max,
                               (1, 1, k, k), (1, 1, s, s), "VALID")
    sm = jax.lax.reduce_window(xa, 0.0, jax.lax.add,
                               (1, 1, k, k), (1, 1, s, s), "VALID")
    return alpha * mx + (1 - alpha) * (sm / (k * k))


if __name__ == "__main__":
    key = jax.random.PRNGKey(0)
    x = jax.random.normal(key, (2, 4, 16, 16), dtype=jnp.float32)
    alpha = 0.7

    # Module config: MixPool(kernel_size=2, stride=2, padding=0, alpha=0.7)
    y = jax.block_until_ready(mixpool(x, alpha, kernel_size=2, stride=2, padding=0))
    y_ref = _reference(x, alpha, kernel_size=2, stride=2, padding=0)
    assert y.shape == (2, 4, 8, 8)
    assert jnp.allclose(y, y_ref, atol=1e-5, rtol=1e-5)

    # Folded path with padding (in-kernel -inf border mask, s == k).
    y2 = jax.block_until_ready(mixpool(x, alpha, kernel_size=2, stride=2, padding=1))
    y2_ref = _reference(x, alpha, kernel_size=2, stride=2, padding=1)
    assert y2.shape == (2, 4, 9, 9)
    assert jnp.allclose(y2, y2_ref, atol=1e-5, rtol=1e-5)

    # Overlapping-window fallback (s != k, padded).
    y3 = jax.block_until_ready(mixpool(x, alpha, kernel_size=3, stride=2, padding=1))
    y3_ref = _reference(x, alpha, kernel_size=3, stride=2, padding=1)
    assert y3.shape == (2, 4, 8, 8)
    assert jnp.allclose(y3, y3_ref, atol=1e-5, rtol=1e-5)

    print("KERNEL_OK")
</pallas_src>

<mosaic_0001>
module attributes {stable_mosaic.version = 11 : i64} {
  func.func @_mixpool_folded_kernel(%arg0: i32, %arg1: i32, %arg2: memref<4x8x64xf32, #tpu.memory_space<vmem>>, %arg3: memref<8x64xf32, #tpu.memory_space<vmem>>) attributes {dimension_semantics = [#tpu.dimension_semantics<parallel>, #tpu.dimension_semantics<parallel>], iteration_bounds = array<i64: 1, 1>, scalar_prefetch = 0 : i64, scratch_operands = 0 : i64, tpu.core_type = #tpu.core_type<tc>, window_params = [{transform_indices = @transform_0, window_bounds = array<i64: 4, 8, 64>}, {transform_indices = @transform_1, window_bounds = array<i64: 8, 64>}]} {
    %cst = arith.constant 0xFF800000 : f32
    %0 = vector.broadcast %cst : f32 to vector<8x64xf32>
    %cst_0 = arith.constant 0.000000e+00 : f32
    %1 = vector.broadcast %cst_0 : f32 to vector<8x64xf32>
    %c0 = arith.constant 0 : index
    %c0_1 = arith.constant 0 : index
    %c0_2 = arith.constant 0 : index
    %2 = vector.load %arg2[%c0, %c0_1, %c0_2] : memref<4x8x64xf32, #tpu.memory_space<vmem>>, vector<1x8x64xf32>
    %3 = vector.shape_cast %2 : vector<1x8x64xf32> to vector<8x64xf32>
    %4 = arith.addf %1, %3 : vector<8x64xf32>
    %5 = arith.maximumf %0, %3 : vector<8x64xf32>
    %c1 = arith.constant 1 : index
    %c0_3 = arith.constant 0 : index
    %c0_4 = arith.constant 0 : index
    %6 = vector.load %arg2[%c1, %c0_3, %c0_4] : memref<4x8x64xf32, #tpu.memory_space<vmem>>, vector<1x8x64xf32>
    %7 = vector.shape_cast %6 : vector<1x8x64xf32> to vector<8x64xf32>
    %8 = arith.addf %4, %7 : vector<8x64xf32>
    %9 = arith.maximumf %5, %7 : vector<8x64xf32>
    %c2 = arith.constant 2 : index
    %c0_5 = arith.constant 0 : index
    %c0_6 = arith.constant 0 : index
    %10 = vector.load %arg2[%c2, %c0_5, %c0_6] : memref<4x8x64xf32, #tpu.memory_space<vmem>>, vector<1x8x64xf32>
    %11 = vector.shape_cast %10 : vector<1x8x64xf32> to vector<8x64xf32>
    %12 = arith.addf %8, %11 : vector<8x64xf32>
    %13 = arith.maximumf %9, %11 : vector<8x64xf32>
    %c3 = arith.constant 3 : index
    %c0_7 = arith.constant 0 : index
    %c0_8 = arith.constant 0 : index
    %14 = vector.load %arg2[%c3, %c0_7, %c0_8] : memref<4x8x64xf32, #tpu.memory_space<vmem>>, vector<1x8x64xf32>
    %15 = vector.shape_cast %14 : vector<1x8x64xf32> to vector<8x64xf32>
    %16 = arith.addf %12, %15 : vector<8x64xf32>
    %17 = arith.maximumf %13, %15 : vector<8x64xf32>
    %cst_9 = arith.constant 2.500000e-01 : f32
    %18 = vector.broadcast %cst_9 : f32 to vector<8x64xf32>
    %19 = arith.mulf %16, %18 : vector<8x64xf32>
    %20 = arith.subf %17, %19 : vector<8x64xf32>
    %cst_10 = arith.constant 0.699999988 : f32
    %21 = vector.broadcast %cst_10 : f32 to vector<8x64xf32>
    %22 = arith.mulf %21, %20 : vector<8x64xf32>
    %23 = arith.addf %19, %22 : vector<8x64xf32>
    %c0_11 = arith.constant 0 : index
    %c0_12 = arith.constant 0 : index
    %24 = vector.load %arg3[%c0_11, %c0_12] : memref<8x64xf32, #tpu.memory_space<vmem>>, vector<8x64xf32>
    tpu.vector_store %arg3[%c0_11, %c0_12], %23 {strides = array<i32>} : memref<8x64xf32, #tpu.memory_space<vmem>>, vector<8x64xf32>,
    return
  }
  func.func @transform_0(%arg0: i32, %arg1: i32) -> (i32, i32, i32) {
    %c0_i32 = arith.constant 0 : i32
    %c0_i32_0 = arith.constant 0 : i32
    return %c0_i32, %arg0, %arg1 : i32, i32, i32
  }
  func.func @transform_1(%arg0: i32, %arg1: i32) -> (i32, i32) {
    %c0_i32 = arith.constant 0 : i32
    return %arg0, %arg1 : i32, i32
  }
}

</mosaic_0001>

<bundles_post_ra>
// kernel: tpu_custom_call.1
= control target key start
LH: loop header
LB: loop body
LE: loop exit
PB: predicated region body
PF: predicated region fallthrough
CT: control target
= control target key end

     0   :  { %6 = vsyncpa [#allocation3], 0  ;;  %s148_s0 = inlined_call_operand.hbm [shape: f32[4,8,64], index: 0, kind: input, shape index: {}]   ;;  %s149_s1 = inlined_call_operand.hbm [shape: f32[8,64], index: 1, kind: output, shape index: {}]  }
   0x1   :  { %7 = vsyncpa [#allocation4], 0  ;;  %s110_s6 = smov [#allocation2]   ;;  %s62_s10 = scalar_lea.hbm %s148_s0, 512 }
   0x2   :  { %s13_s7 = sshll.u32 %s110_s6, 4  ;;  %p63_p0 = scmp.ne.s32.totalorder %s148_s0, %s62_s10  ;;  %s14_s7 = int_to_ptr.vmem [resolvable:$true] %s13_s7 }
   0x3   :  { %p66_p1 = scmp.lt.u32.totalorder %s62_s10, %s148_s0 }
   0x5   :  { %p68_p2 = pnand %p66_p1, %p63_p0 }
   0x7   :  { %71 = shalt.err (!%p68_p2)
}
   0x8   :  { %s72_s15 = scalar_lea.vmem %s14_s7, 512  ;;  %p77_p4 = scmp.lt.s32.totalorder %s14_s7, %s14_s7 }
   0x9   :  { %p73_p3 = scmp.ne.s32.totalorder %s14_s7, %s72_s15  ;;  %p78_p5 = scmp.lt.s32.totalorder %s72_s15, %s72_s15 }
   0xb   :  { %p79_p6 = por %p78_p5, %p77_p4 }
   0xd   :  { %p80_p7 = pnand %p79_p6, %p73_p3 }
   0xf   :  { %83 = shalt.err (!%p80_p7)
}
  0x10   :  { %s111_s16 = smov 128   ;;  %s112_s17 = smov 8  }
  0x11   :  { %19 = dma.hbm_to_vmem [thread:$0]  %s148_s0, 512, %s14_s7, [#allocation3], %s111_s16, %s111_s16, %s112_s17  }
  0x12   :  { %106 = dma.done.wait [#allocation3], 512  }
  0x13   :  { %107 = vsyncadd [#allocation3], 4294966784  ;;  %v23_v0 = vld [vmem:[#allocation2] sm:$0xff]  ;;  %v26_v1 = vld [vmem:[#allocation2 + $0x8] sm:$0xff]  ;;  %s113_s20 = smov [#allocation5]   ;;  %vm41_vm0 = vcmask 523264  }
  0x14   :  { %v30_v2 = vld [vmem:[#allocation2 + $0x10] sm:$0xff]  ;;  %v27_v3 = vadd.f32 %v26_v1, %v23_v0  ;;  %v28_v4 = vmax.f32 %v23_v0, %v26_v1  ;;  %v34_v5 = vld [vmem:[#allocation2 + $0x18] sm:$0xff]  ;;  %s49_s21 = sshll.u32 %s113_s20, 4  ;;  %s50_s21 = int_to_ptr.vmem [resolvable:$true] %s49_s21 }
  0x15   :  { %s84_s0 = scalar_lea.vmem %s50_s21, 128  ;;  %p89_p9 = scmp.lt.s32.totalorder %s50_s21, %s50_s21 }
  0x16   :  { %v31_v6 = vadd.f32 %v30_v2, %v27_v3  ;;  %v32_v7 = vmax.f32 %v28_v4, %v30_v2  ;;  %p85_p8 = scmp.ne.s32.totalorder %s50_s21, %s84_s0  ;;  %p90_p10 = scmp.lt.s32.totalorder %s84_s0, %s84_s0 }
  0x18   :  { %v35_v8 = vadd.f32 %v34_v5, %v31_v6  ;;  %v36_v9 = vmax.f32 %v32_v7, %v34_v5  ;;  %p91_p11 = por %p90_p10, %p89_p9 }
  0x1a   :  { %v37_v10 = vmul.f32 0.25, %v35_v8  ;;  %p92_p12 = pnand %p91_p11, %p85_p8 }
  0x1c   :  { %v38_v11 = vsub.f32 %v36_v9, %v37_v10 }
  0x1e   :  { %v39_v12 = vmul.f32 0.7, %v38_v11 }
  0x20   :  { %v40_v13 = vadd.f32 %v39_v12, %v37_v10 }
  0x22   :  { %42 = vst.msk [vmem:[#allocation5] sm:$0xff] %vm41_vm0, %v40_v13 }
  0x23   :  { %95 = shalt.err (!%p92_p12)
}
  0x24   :  { %s96_s24 = scalar_lea.hbm %s149_s1, 128 }
  0x25   :  { %p97_p13 = scmp.ne.s32.totalorder %s149_s1, %s96_s24  ;;  %p100_p0 = scmp.lt.u32.totalorder %s96_s24, %s149_s1 }
  0x27   :  { %p102_p1 = pnand %p100_p0, %p97_p13 }
  0x29   :  { %105 = shalt.err (!%p102_p1)
}
  0x2a   :  { %52 = dma.vmem_to_hbm [thread:$0]  %s50_s21, 128, %s149_s1, [#allocation4]  }
  0x2b   :  { %108 = dma.done.wait [#allocation4], 128  }
  0x2c   :  { %109 = vsyncadd [#allocation4], 4294967168 }
  0x2d   :  { %56 = vsyncpa [#allocation3], 1 }
  0x2e   :  { %57 = vsyncpa [#allocation4], 1 }

</bundles_post_ra>
